<compile_context>
chip_gen: v7x
topology: tpu7x:2x2x1
jax: 0.10.0
libtpu: 0.0.40
codegen_flags: <defaults>
</compile_context>

<pallas_src>
import functools

import jax
import jax.numpy as jnp
from jax.experimental import pallas as pl
from jax.experimental.pallas import tpu as pltpu


def _round_up(x, m):
    return ((x + m - 1) // m) * m


def _cdiv(a, b):
    return (a + b - 1) // b


def _online_supcon_step(anchor_ref, contrast_ref, out_ref,
                        m_sc, d_sc, ps_sc, ms_sc,
                        pos_mask, denom_mask, valid_col, valid_row, *,
                        inv_temperature, loss_scale):
    """One (anchor tile, contrast tile) step of the online SupCon reduction.

    anchor_ref   : (TM, D)  anchor tile (LHS, compute dtype)
    contrast_ref : (D, TK)  contrast tile, pre-transposed (native MXU RHS)
    pos_mask     : (TM, TK) bool positive-pair mask (self/pad columns False)
    denom_mask   : (TM, TK) bool columns included in the softmax denominator
    valid_col    : (1, TK)  bool, False for padded contrast columns
    valid_row    : (TM, 1)  bool, False for padded anchor rows
    Scratch      : (TM, 1) f32 running max / denom / pos-dot / mask-count.
    """
    k = pl.program_id(1)

    @pl.when(k == 0)
    def _init():
        m_sc[...] = jnp.full(m_sc.shape, -jnp.inf, jnp.float32)
        d_sc[...] = jnp.zeros(d_sc.shape, jnp.float32)
        ps_sc[...] = jnp.zeros(ps_sc.shape, jnp.float32)
        ms_sc[...] = jnp.zeros(ms_sc.shape, jnp.float32)

    # (TM, TK) logits; f32 MXU accumulation regardless of the feed dtype.
    logits = jnp.dot(anchor_ref[...], contrast_ref[...],
                     preferred_element_type=jnp.float32) * inv_temperature

    neg_inf = jnp.float32(-jnp.inf)

    # Online log-sum-exp over the valid, non-self columns.  The running max
    # includes the self column (like the PyTorch reference); padded columns
    # are excluded so they can never dominate the shift.
    logits_valid = jnp.where(valid_col, logits, neg_inf)
    m_prev = m_sc[...]
    m_new = jnp.maximum(m_prev, jnp.max(logits_valid, axis=1, keepdims=True))
    alpha = jnp.exp(m_prev - m_new)
    e = jnp.exp(jnp.where(denom_mask, logits, neg_inf) - m_new)
    d_sc[...] = alpha * d_sc[...] + jnp.sum(e, axis=1, keepdims=True)
    m_sc[...] = m_new

    # Positive-pair accumulators are linear in the logits -> no shift needed.
    pm = pos_mask.astype(jnp.float32)
    ps_sc[...] += jnp.sum(pm * logits, axis=1, keepdims=True)
    ms_sc[...] += jnp.sum(pm, axis=1, keepdims=True)

    @pl.when(k == pl.num_programs(1) - 1)
    def _finalize():
        mask_sum = ms_sc[...]
        # Exact because mask_sum is a small sum of 0/1 values.
        mask_sum_safe = jnp.where(mask_sum == 0.0, 1.0, mask_sum)
        log_denom = m_sc[...] + jnp.log(d_sc[...])
        mean_log_prob_pos = (ps_sc[...] - mask_sum * log_denom) * pl.reciprocal(
            mask_sum_safe)
        loss = jnp.where(valid_row, loss_scale * mean_log_prob_pos, 0.0)
        out_ref[...] = loss   # (TM, 1), written once per anchor tile


def _supcon_labels_kernel(g_rows_ref, g_cols_ref, anchor_ref, contrast_ref,
                          out_ref, m_sc, d_sc, ps_sc, ms_sc, *,
                          inv_temperature, loss_scale, n_anchor, n_contrast):
    """Labels / SimCLR path: positive mask rebuilt from int32 group-id vectors."""
    i = pl.program_id(0)
    k = pl.program_id(1)
    tm = anchor_ref.shape[0]
    tk = contrast_ref.shape[1]

    row_ids = i * tm + jax.lax.broadcasted_iota(jnp.int32, (tm, 1), 0)
    col_ids = k * tk + jax.lax.broadcasted_iota(jnp.int32, (1, tk), 1)
    not_self = col_ids != row_ids                       # (TM, TK)
    valid_col = col_ids < n_contrast                    # (1, TK)
    valid_row = row_ids < n_anchor                      # (TM, 1)
    denom_mask = jnp.logical_and(not_self, valid_col)

    # Padded rows carry gid -1 and padded columns gid -2 -> never "same group".
    pos_mask = jnp.logical_and(g_rows_ref[...] == g_cols_ref[...], not_self)

    _online_supcon_step(anchor_ref, contrast_ref, out_ref,
                        m_sc, d_sc, ps_sc, ms_sc,
                        pos_mask, denom_mask, valid_col, valid_row,
                        inv_temperature=inv_temperature, loss_scale=loss_scale)


def _supcon_mask_kernel(pmask_ref, anchor_ref, contrast_ref,
                        out_ref, m_sc, d_sc, ps_sc, ms_sc, *,
                        inv_temperature, loss_scale, n_anchor, n_contrast):
    """Explicit-mask fallback: tiled int8 mask, self column removed in-kernel."""
    i = pl.program_id(0)
    k = pl.program_id(1)
    tm = anchor_ref.shape[0]
    tk = contrast_ref.shape[1]

    row_ids = i * tm + jax.lax.broadcasted_iota(jnp.int32, (tm, 1), 0)
    col_ids = k * tk + jax.lax.broadcasted_iota(jnp.int32, (1, tk), 1)
    not_self = col_ids != row_ids
    valid_col = col_ids < n_contrast
    valid_row = row_ids < n_anchor
    denom_mask = jnp.logical_and(not_self, valid_col)

    pos_mask = jnp.logical_and(pmask_ref[...] != 0, not_self)

    _online_supcon_step(anchor_ref, contrast_ref, out_ref,
                        m_sc, d_sc, ps_sc, ms_sc,
                        pos_mask, denom_mask, valid_col, valid_row,
                        inv_temperature=inv_temperature, loss_scale=loss_scale)


def supcon_loss(features, labels=None, mask=None, *, temperature=0.07,
                base_temperature=0.07, contrast_mode='all', tile_m=128,
                tile_k=1024, compute_dtype=jnp.bfloat16, interpret=False):
    """JAX/Pallas implementation of SupConLoss.forward.

    features: [bsz, n_views, ...] (extra dims flattened into the feature dim)
    labels:   [bsz] int labels (optional)
    mask:     [bsz, bsz] 0/1 mask (optional; mutually exclusive with labels)
    tile_m:   anchor-row tile (sweep up to 256 on v6e; 128 on v7x/v5e)
    tile_k:   contrast-column tile for the online-LSE reduction
    compute_dtype: MXU feed dtype.  Defaults to bfloat16 (fast MXU path, f32
        accumulation).  Pass jnp.float32 for bit-faithful logits.
    """
    if features.ndim < 3:
        raise ValueError('`features` needs to be [bsz, n_views, ...]')
    if features.ndim > 3:
        features = features.reshape(features.shape[0], features.shape[1], -1)
    bsz, n_views, dim = features.shape

    if labels is not None and mask is not None:
        raise ValueError('Cannot define both `labels` and `mask`')

    contrast_count = n_views
    # contrast_feature = cat(unbind(features, dim=1), dim=0) -> [n_views*bsz, D]
    contrast_feature = jnp.transpose(features, (1, 0, 2)).reshape(
        n_views * bsz, dim)
    if contrast_mode == 'one':
        anchor_feature = features[:, 0]
        anchor_count = 1
    elif contrast_mode == 'all':
        anchor_feature = contrast_feature
        anchor_count = contrast_count
    else:
        raise ValueError(f'Unknown mode: {contrast_mode}')

    n_anchor = anchor_count * bsz
    n_contrast = contrast_count * bsz

    compute_dtype = jnp.dtype(compute_dtype)
    anchor_feature = anchor_feature.astype(compute_dtype)
    # Pre-transpose the RHS to (D, N): native MXU RHS layout (no per-step
    # relayout of a grid-invariant block) and lane-dense for small D.
    contrast_t = jnp.transpose(contrast_feature, (1, 0)).astype(compute_dtype)

    # ---- Anchor-row tiling.  int8 mask streaming needs 32-row alignment. ----
    row_align = 32 if mask is not None else 8
    tm = _round_up(min(int(tile_m), n_anchor), row_align)
    # Prefer >=2 anchor tiles so the "parallel" axis can shard across the two
    # TensorCores on v7x.
    if _cdiv(n_anchor, tm) == 1 and n_anchor > 2 * row_align:
        tm = _round_up(_cdiv(n_anchor, 2), row_align)
    n_pad = _round_up(n_anchor, tm)
    n_grid_m = n_pad // tm
    if n_pad != n_anchor:
        anchor_feature = jnp.pad(anchor_feature,
                                 ((0, n_pad - n_anchor), (0, 0)))

    # ---- Contrast-column tiling (online LSE over the "arbitrary" axis). ----
    tk = min(int(tile_k), n_contrast)
    if tk < n_contrast:
        tk = _round_up(tk, 128)            # lane-aligned partial tiles
    nk_pad = _round_up(n_contrast, tk)
    n_grid_k = nk_pad // tk
    if nk_pad != n_contrast:
        contrast_t = jnp.pad(contrast_t, ((0, 0), (0, nk_pad - n_contrast)))

    # Grid-invariant blocks only need a single pipeline buffer.
    inv_bufs = dict(pipeline_mode=pl.Buffered(1)) if n_grid_k == 1 else {}

    anchor_spec = pl.BlockSpec((tm, dim), lambda i, k: (i, 0))
    contrast_spec = pl.BlockSpec((dim, tk), lambda i, k: (0, k), **inv_bufs)
    out_spec = pl.BlockSpec((tm, 1), lambda i, k: (i, 0))
    out_shape = jax.ShapeDtypeStruct((n_pad, 1), jnp.float32)
    scratch = [pltpu.VMEM((tm, 1), jnp.float32)] * 4   # m, denom, pos_dot, cnt

    # ---- Scoped-VMEM budget: tiles + buffers + f32 temporaries + slack. ----
    csize = compute_dtype.itemsize
    contrast_bufs = 1 if n_grid_k == 1 else 2
    vmem_est = (
        contrast_bufs * dim * tk * csize        # contrast tile(s)
        + 2 * tm * dim * csize                  # double-buffered anchor tile
        + (2 * tm * tk if mask is not None else 0)   # int8 mask stream
        + 2 * (tm + nk_pad) * 4                 # group-id vectors
        + 8 * tm * tk * 4                       # (TM, TK) f32 intermediates
        + 8 * tm * 4                            # accumulators + loss
        + 2 * tm * 4                            # output blocks
    )
    vmem_limit = int(min(max(int(vmem_est * 1.3) + (2 << 20), 32 << 20),
                         64 << 20))
    cparams = pltpu.CompilerParams(
        dimension_semantics=("parallel", "arbitrary"),
        vmem_limit_bytes=vmem_limit)

    kernel_consts = dict(
        inv_temperature=float(1.0 / temperature),
        loss_scale=float(-(temperature / base_temperature)),
        n_anchor=n_anchor,
        n_contrast=n_contrast,
    )

    if mask is None:
        # Labels (or SimCLR eye-mask, i.e. labels == arange) path: masks are
        # rebuilt in-kernel from small int32 group-id vectors.
        if labels is None:
            gids = jnp.arange(bsz, dtype=jnp.int32)
        else:
            labels = jnp.asarray(labels).reshape(-1)
            if labels.shape[0] != bsz:
                raise ValueError('Num of labels does not match num of features')
            gids = labels.astype(jnp.int32)
        g_cols = jnp.tile(gids, contrast_count)
        g_cols = jnp.pad(g_cols, (0, nk_pad - n_contrast),
                         constant_values=-2).reshape(1, nk_pad)
        g_rows = jnp.tile(gids, anchor_count)
        g_rows = jnp.pad(g_rows, (0, n_pad - n_anchor),
                         constant_values=-1).reshape(n_pad, 1)

        kernel = functools.partial(_supcon_labels_kernel, **kernel_consts)
        per_row = pl.pallas_call(
            kernel,
            out_shape=out_shape,
            grid_spec=pltpu.PrefetchScalarGridSpec(
                num_scalar_prefetch=0,
                grid=(n_grid_m, n_grid_k),
                in_specs=[
                    pl.BlockSpec((tm, 1), lambda i, k: (i, 0)),          # row gids
                    pl.BlockSpec((1, tk), lambda i, k: (0, k), **inv_bufs),  # col gids
                    anchor_spec,
                    contrast_spec,
                ],
                out_specs=out_spec,
                scratch_shapes=scratch),
            compiler_params=cparams,
            interpret=interpret,
        )(g_rows, g_cols, anchor_feature, contrast_t)
    else:
        # Explicit-mask fallback: tiled [bsz, bsz] mask streamed as int8 (4x
        # cheaper than f32); self column removed in-kernel.
        # TODO(synk): non-binary mask weights are binarized here.
        base_mask = (jnp.asarray(mask) != 0).astype(jnp.int8)
        pmask = jnp.tile(base_mask, (anchor_count, contrast_count))
        pmask = jnp.pad(pmask, ((0, n_pad - n_anchor),
                                (0, nk_pad - n_contrast)))

        kernel = functools.partial(_supcon_mask_kernel, **kernel_consts)
        per_row = pl.pallas_call(
            kernel,
            out_shape=out_shape,
            grid_spec=pltpu.PrefetchScalarGridSpec(
                num_scalar_prefetch=0,
                grid=(n_grid_m, n_grid_k),
                in_specs=[
                    pl.BlockSpec((tm, tk), lambda i, k: (i, k)),   # int8 mask
                    anchor_spec,
                    contrast_spec,
                ],
                out_specs=out_spec,
                scratch_shapes=scratch),
            compiler_params=cparams,
            interpret=interpret,
        )(pmask, anchor_feature, contrast_t)

    # loss.view(anchor_count, batch_size).mean() == mean over all anchor rows.
    # Padded rows contribute exactly 0.
    return (jnp.sum(per_row) / n_anchor).astype(jnp.float32)


def _supcon_loss_ref(features, labels=None, mask=None, *, temperature=0.07,
                     base_temperature=0.07, contrast_mode='all',
                     compute_dtype=jnp.float32):
    """Pure-JAX reference mirroring the PyTorch forward."""
    bsz, n_views, dim = features.shape
    if labels is None and mask is None:
        base_mask = jnp.eye(bsz, dtype=jnp.float32)
    elif labels is not None:
        l = labels.reshape(-1, 1)
        base_mask = (l == l.T).astype(jnp.float32)
    else:
        base_mask = (mask != 0).astype(jnp.float32)

    contrast_count = n_views
    contrast = jnp.transpose(features, (1, 0, 2)).reshape(n_views * bsz, dim)
    if contrast_mode == 'one':
        anchor = features[:, 0]
        anchor_count = 1
    else:
        anchor = contrast
        anchor_count = contrast_count

    a = anchor.astype(compute_dtype)
    c = contrast.astype(compute_dtype)
    adc = jnp.matmul(a, c.T, preferred_element_type=jnp.float32) / temperature
    logits = adc - jnp.max(adc, axis=1, keepdims=True)

    n_a, n_c = anchor_count * bsz, contrast_count * bsz
    m = jnp.tile(base_mask, (anchor_count, contrast_count))
    lm = 1.0 - jnp.eye(n_a, n_c, dtype=jnp.float32)
    m = m * lm
    exp_logits = jnp.exp(logits) * lm
    log_prob = logits - jnp.log(jnp.sum(exp_logits, axis=1, keepdims=True))
    msum = jnp.sum(m, axis=1)
    msum = jnp.where(msum == 0.0, 1.0, msum)
    mean_lpp = jnp.sum(m * log_prob, axis=1) / msum
    loss = -(temperature / base_temperature) * mean_lpp
    return jnp.mean(loss)


if __name__ == "__main__":
    key = jax.random.PRNGKey(0)
    keys = jax.random.split(key, 6)

    def make_feats(k, bsz, n_views, dim):
        f = jax.random.normal(k, (bsz, n_views, dim), dtype=jnp.float32)
        return f / jnp.linalg.norm(f, axis=-1, keepdims=True)

    failures = []

    def check(name, got, want, rtol, atol):
        got = jax.block_until_ready(got)
        want = jax.block_until_ready(want)
        if not bool(jnp.allclose(got, want, rtol=rtol, atol=atol)):
            failures.append((name, float(got), float(want)))

    f32 = jnp.float32

    # 1) Supervised labels, 'all' mode, f32, single tile on both axes
    #    (exercises the Buffered(1) grid-invariant contrast path).
    f1 = make_feats(keys[0], 8, 2, 32)
    l1 = jnp.array([0, 1, 2, 3, 0, 1, 2, 3], dtype=jnp.int32)
    check("labels_all_f32",
          supcon_loss(f1, labels=l1, compute_dtype=f32),
          _supcon_loss_ref(f1, labels=l1), 1e-4, 1e-5)

    # 2) Multi-tile + padding on BOTH grid axes: n_anchor = n_contrast = 192,
    #    tm = 128 (pad to 256), tk = 128 (pad to 256) -> 2x2 grid, online LSE.
    f2 = make_feats(keys[1], 96, 2, 64)
    l2 = jnp.arange(96, dtype=jnp.int32) % 6
    check("multi_tile_padded",
          supcon_loss(f2, labels=l2, tile_m=128, tile_k=128, compute_dtype=f32),
          _supcon_loss_ref(f2, labels=l2), 1e-4, 1e-5)

    # 3) SimCLR degenerate case (labels=None, mask=None).
    check("simclr_eye_mask",
          supcon_loss(f1, compute_dtype=f32),
          _supcon_loss_ref(f1), 1e-4, 1e-5)

    # 4) Explicit (asymmetric, binary) mask path -> int8 mask stream.
    m4 = (jax.random.uniform(keys[2], (8, 8)) > 0.5).astype(jnp.float32)
    check("explicit_mask",
          supcon_loss(f1, mask=m4, compute_dtype=f32),
          _supcon_loss_ref(f1, mask=m4), 1e-4, 1e-5)

    # 5) contrast_mode='one'.
    check("labels_one_mode",
          supcon_loss(f1, labels=l1, contrast_mode='one', compute_dtype=f32),
          _supcon_loss_ref(f1, labels=l1, contrast_mode='one'), 1e-4, 1e-5)

    # 6) Default bf16 MXU feed (f32 accumulation) vs bf16-quantized reference;
    #    anchor axis auto-split into 2 tiles (v7x dual-TC path).
    f6 = make_feats(keys[3], 16, 2, 128)
    l6 = jnp.arange(16, dtype=jnp.int32) % 4
    check("labels_bf16_default",
          supcon_loss(f6, labels=l6),
          _supcon_loss_ref(f6, labels=l6, compute_dtype=jnp.bfloat16),
          2e-3, 2e-3)

    assert not failures, f"SupCon Pallas kernel mismatches: {failures}"
    print("KERNEL_OK")
</pallas_src>

<mosaic_0001>
module attributes {stable_mosaic.version = 11 : i64} {
  func.func @_supcon_labels_kernel(%arg0: i32, %arg1: i32, %arg2: memref<16x1xi32, #tpu.memory_space<vmem>>, %arg3: memref<1x16xi32, #tpu.memory_space<vmem>>, %arg4: memref<16x32xf32, #tpu.memory_space<vmem>>, %arg5: memref<32x16xf32, #tpu.memory_space<vmem>>, %arg6: memref<16x1xf32, #tpu.memory_space<vmem>>, %arg7: memref<16x1xf32, #tpu.memory_space<vmem>>, %arg8: memref<16x1xf32, #tpu.memory_space<vmem>>, %arg9: memref<16x1xf32, #tpu.memory_space<vmem>>, %arg10: memref<16x1xf32, #tpu.memory_space<vmem>>) attributes {dimension_semantics = [#tpu.dimension_semantics<parallel>, #tpu.dimension_semantics<arbitrary>], iteration_bounds = array<i64: 1, 1>, scalar_prefetch = 0 : i64, scratch_operands = 4 : i64, tpu.core_type = #tpu.core_type<tc>, window_params = [{transform_indices = @transform_0, window_bounds = array<i64: 16, 1>}, {pipeline_mode = #tpu.pipeline_mode<synchronous>, transform_indices = @transform_1, window_bounds = array<i64: 1, 16>}, {transform_indices = @transform_2, window_bounds = array<i64: 16, 32>}, {pipeline_mode = #tpu.pipeline_mode<synchronous>, transform_indices = @transform_3, window_bounds = array<i64: 32, 16>}, {transform_indices = @transform_4, window_bounds = array<i64: 16, 1>}]} {
    %c16_i32 = arith.constant 16 : i32
    %0 = arith.muli %arg0, %c16_i32 : i32
    %1 = tpu.iota {dimensions = array<i32: 0>} : vector<16x1xi32>
    %2 = vector.broadcast %0 : i32 to vector<16x1xi32>
    %3 = arith.addi %2, %1 : vector<16x1xi32>
    %c16_i32_0 = arith.constant 16 : i32
    %4 = arith.muli %arg1, %c16_i32_0 : i32
    %5 = tpu.iota {dimensions = array<i32: 1>} : vector<1x16xi32>
    %6 = vector.broadcast %4 : i32 to vector<1x16xi32>
    %7 = arith.addi %6, %5 : vector<1x16xi32>
    %8 = vector.broadcast %7 : vector<1x16xi32> to vector<16x16xi32>
    %9 = vector.broadcast %3 : vector<16x1xi32> to vector<16x16xi32>
    %10 = arith.cmpi ne, %8, %9 : vector<16x16xi32>
    %c16_i32_1 = arith.constant 16 : i32
    %11 = vector.broadcast %c16_i32_1 : i32 to vector<1x16xi32>
    %12 = arith.cmpi slt, %7, %11 : vector<1x16xi32>
    %c16_i32_2 = arith.constant 16 : i32
    %13 = vector.broadcast %c16_i32_2 : i32 to vector<16x1xi32>
    %14 = arith.cmpi slt, %3, %13 : vector<16x1xi32>
    %15 = vector.broadcast %12 : vector<1x16xi1> to vector<16x16xi1>
    %16 = arith.andi %10, %15 : vector<16x16xi1>
    %c0 = arith.constant 0 : index
    %c0_3 = arith.constant 0 : index
    %17 = vector.load %arg2[%c0, %c0_3] : memref<16x1xi32, #tpu.memory_space<vmem>>, vector<16x1xi32>
    %c0_4 = arith.constant 0 : index
    %c0_5 = arith.constant 0 : index
    %18 = vector.load %arg3[%c0_4, %c0_5] : memref<1x16xi32, #tpu.memory_space<vmem>>, vector<1x16xi32>
    %19 = vector.broadcast %17 : vector<16x1xi32> to vector<16x16xi32>
    %20 = vector.broadcast %18 : vector<1x16xi32> to vector<16x16xi32>
    %21 = arith.cmpi eq, %19, %20 : vector<16x16xi32>
    %22 = arith.andi %21, %10 : vector<16x16xi1>
    %c0_i32 = arith.constant 0 : i32
    %23 = arith.cmpi eq, %arg1, %c0_i32 : i32
    %24 = arith.extui %23 : i1 to i32
    %c0_i32_6 = arith.constant 0 : i32
    %25 = arith.cmpi ne, %24, %c0_i32_6 : i32
    scf.if %25 {
      %cst_36 = arith.constant 0xFF800000 : f32
      %69 = vector.broadcast %cst_36 : f32 to vector<16x1xf32>
      %c0_37 = arith.constant 0 : index
      %c0_38 = arith.constant 0 : index
      %70 = vector.load %arg7[%c0_37, %c0_38] : memref<16x1xf32, #tpu.memory_space<vmem>>, vector<16x1xf32>
      tpu.vector_store %arg7[%c0_37, %c0_38], %69 {strides = array<i32>} : memref<16x1xf32, #tpu.memory_space<vmem>>, vector<16x1xf32>,
      %cst_39 = arith.constant 0.000000e+00 : f32
      %71 = vector.broadcast %cst_39 : f32 to vector<16x1xf32>
      %c0_40 = arith.constant 0 : index
      %c0_41 = arith.constant 0 : index
      %72 = vector.load %arg8[%c0_40, %c0_41] : memref<16x1xf32, #tpu.memory_space<vmem>>, vector<16x1xf32>
      tpu.vector_store %arg8[%c0_40, %c0_41], %71 {strides = array<i32>} : memref<16x1xf32, #tpu.memory_space<vmem>>, vector<16x1xf32>,
      %cst_42 = arith.constant 0.000000e+00 : f32
      %73 = vector.broadcast %cst_42 : f32 to vector<16x1xf32>
      %c0_43 = arith.constant 0 : index
      %c0_44 = arith.constant 0 : index
      %74 = vector.load %arg9[%c0_43, %c0_44] : memref<16x1xf32, #tpu.memory_space<vmem>>, vector<16x1xf32>
      tpu.vector_store %arg9[%c0_43, %c0_44], %73 {strides = array<i32>} : memref<16x1xf32, #tpu.memory_space<vmem>>, vector<16x1xf32>,
      %cst_45 = arith.constant 0.000000e+00 : f32
      %75 = vector.broadcast %cst_45 : f32 to vector<16x1xf32>
      %c0_46 = arith.constant 0 : index
      %c0_47 = arith.constant 0 : index
      %76 = vector.load %arg10[%c0_46, %c0_47] : memref<16x1xf32, #tpu.memory_space<vmem>>, vector<16x1xf32>
      tpu.vector_store %arg10[%c0_46, %c0_47], %75 {strides = array<i32>} : memref<16x1xf32, #tpu.memory_space<vmem>>, vector<16x1xf32>,
    } else {
    }
    %c0_7 = arith.constant 0 : index
    %c0_8 = arith.constant 0 : index
    %26 = vector.load %arg4[%c0_7, %c0_8] : memref<16x32xf32, #tpu.memory_space<vmem>>, vector<16x32xf32>
    %c0_9 = arith.constant 0 : index
    %c0_10 = arith.constant 0 : index
    %27 = vector.load %arg5[%c0_9, %c0_10] : memref<32x16xf32, #tpu.memory_space<vmem>>, vector<32x16xf32>
    %cst = arith.constant dense<0.000000e+00> : vector<16x16xf32>
    %28 = tpu.matmul %26, %27, %cst {dimension_numbers = #tpu.dot_dimension_numbers<[1], [0], [0], [1], [0, 0, 1, 1], [], []>} : vector<16x32xf32>, vector<32x16xf32>, vector<16x16xf32> -> vector<16x16xf32>
    %cst_11 = arith.constant 14.2857141 : f32
    %29 = vector.broadcast %cst_11 : f32 to vector<16x16xf32>
    %30 = arith.mulf %28, %29 : vector<16x16xf32>
    %cst_12 = arith.constant 0xFF800000 : f32
    %31 = vector.shape_cast %12 : vector<1x16xi1> to vector<1x16xi1>
    %32 = vector.broadcast %31 : vector<1x16xi1> to vector<16x16xi1>
    %33 = vector.broadcast %cst_12 : f32 to vector<16x16xf32>
    %34 = arith.select %32, %30, %33 : vector<16x16xi1>, vector<16x16xf32>
    %c0_13 = arith.constant 0 : index
    %c0_14 = arith.constant 0 : index
    %35 = vector.load %arg7[%c0_13, %c0_14] : memref<16x1xf32, #tpu.memory_space<vmem>>, vector<16x1xf32>
    %cst_15 = arith.constant dense<0xFF800000> : vector<16xf32>
    %36 = vector.multi_reduction <maximumf>, %34, %cst_15 [1] : vector<16x16xf32> to vector<16xf32>
    %37 = vector.shape_cast %36 : vector<16xf32> to vector<16x1xf32>
    %38 = arith.maximumf %35, %37 : vector<16x1xf32>
    %39 = arith.subf %35, %38 : vector<16x1xf32>
    %40 = math.exp %39 : vector<16x1xf32>
    %cst_16 = arith.constant 0xFF800000 : f32
    %41 = vector.broadcast %cst_16 : f32 to vector<16x16xf32>
    %42 = arith.select %16, %30, %41 : vector<16x16xi1>, vector<16x16xf32>
    %43 = vector.broadcast %38 : vector<16x1xf32> to vector<16x16xf32>
    %44 = arith.subf %42, %43 : vector<16x16xf32>
    %45 = math.exp %44 : vector<16x16xf32>
    %c0_17 = arith.constant 0 : index
    %c0_18 = arith.constant 0 : index
    %46 = vector.load %arg8[%c0_17, %c0_18] : memref<16x1xf32, #tpu.memory_space<vmem>>, vector<16x1xf32>
    %47 = arith.mulf %40, %46 : vector<16x1xf32>
    %cst_19 = arith.constant dense<0.000000e+00> : vector<16xf32>
    %48 = vector.multi_reduction <add>, %45, %cst_19 [1] : vector<16x16xf32> to vector<16xf32>
    %49 = vector.shape_cast %48 : vector<16xf32> to vector<16x1xf32>
    %50 = arith.addf %47, %49 : vector<16x1xf32>
    %c0_20 = arith.constant 0 : index
    %c0_21 = arith.constant 0 : index
    %51 = vector.load %arg8[%c0_20, %c0_21] : memref<16x1xf32, #tpu.memory_space<vmem>>, vector<16x1xf32>
    tpu.vector_store %arg8[%c0_20, %c0_21], %50 {strides = array<i32>} : memref<16x1xf32, #tpu.memory_space<vmem>>, vector<16x1xf32>,
    %c0_22 = arith.constant 0 : index
    %c0_23 = arith.constant 0 : index
    %52 = vector.load %arg7[%c0_22, %c0_23] : memref<16x1xf32, #tpu.memory_space<vmem>>, vector<16x1xf32>
    tpu.vector_store %arg7[%c0_22, %c0_23], %38 {strides = array<i32>} : memref<16x1xf32, #tpu.memory_space<vmem>>, vector<16x1xf32>,
    %53 = arith.extui %22 : vector<16x16xi1> to vector<16x16xi32>
    %54 = arith.sitofp %53 : vector<16x16xi32> to vector<16x16xf32>
    %c0_24 = arith.constant 0 : index
    %c0_25 = arith.constant 0 : index
    %55 = vector.load %arg9[%c0_24, %c0_25] : memref<16x1xf32, #tpu.memory_space<vmem>>, vector<16x1xf32>
    %56 = arith.mulf %54, %30 : vector<16x16xf32>
    %cst_26 = arith.constant dense<0.000000e+00> : vector<16xf32>
    %57 = vector.multi_reduction <add>, %56, %cst_26 [1] : vector<16x16xf32> to vector<16xf32>
    %58 = vector.shape_cast %57 : vector<16xf32> to vector<16x1xf32>
    %59 = arith.addf %55, %58 : vector<16x1xf32>
    %c0_27 = arith.constant 0 : index
    %c0_28 = arith.constant 0 : index
    %60 = vector.load %arg9[%c0_27, %c0_28] : memref<16x1xf32, #tpu.memory_space<vmem>>, vector<16x1xf32>
    tpu.vector_store %arg9[%c0_27, %c0_28], %59 {strides = array<i32>} : memref<16x1xf32, #tpu.memory_space<vmem>>, vector<16x1xf32>,
    %c0_29 = arith.constant 0 : index
    %c0_30 = arith.constant 0 : index
    %61 = vector.load %arg10[%c0_29, %c0_30] : memref<16x1xf32, #tpu.memory_space<vmem>>, vector<16x1xf32>
    %cst_31 = arith.constant dense<0.000000e+00> : vector<16xf32>
    %62 = vector.multi_reduction <add>, %54, %cst_31 [1] : vector<16x16xf32> to vector<16xf32>
    %63 = vector.shape_cast %62 : vector<16xf32> to vector<16x1xf32>
    %64 = arith.addf %61, %63 : vector<16x1xf32>
    %c0_32 = arith.constant 0 : index
    %c0_33 = arith.constant 0 : index
    %65 = vector.load %arg10[%c0_32, %c0_33] : memref<16x1xf32, #tpu.memory_space<vmem>>, vector<16x1xf32>
    tpu.vector_store %arg10[%c0_32, %c0_33], %64 {strides = array<i32>} : memref<16x1xf32, #tpu.memory_space<vmem>>, vector<16x1xf32>,
    %c0_i32_34 = arith.constant 0 : i32
    %66 = arith.cmpi eq, %arg1, %c0_i32_34 : i32
    %67 = arith.extui %66 : i1 to i32
    %c0_i32_35 = arith.constant 0 : i32
    %68 = arith.cmpi ne, %67, %c0_i32_35 : i32
    scf.if %68 {
      %c0_36 = arith.constant 0 : index
      %c0_37 = arith.constant 0 : index
      %69 = vector.load %arg10[%c0_36, %c0_37] : memref<16x1xf32, #tpu.memory_space<vmem>>, vector<16x1xf32>
      %cst_38 = arith.constant 0.000000e+00 : f32
      %70 = vector.broadcast %cst_38 : f32 to vector<16x1xf32>
      %71 = arith.cmpf oeq, %69, %70 : vector<16x1xf32>
      %cst_39 = arith.constant 1.000000e+00 : f32
      %72 = vector.broadcast %cst_39 : f32 to vector<16x1xf32>
      %73 = arith.select %71, %72, %69 : vector<16x1xi1>, vector<16x1xf32>
      %c0_40 = arith.constant 0 : index
      %c0_41 = arith.constant 0 : index
      %74 = vector.load %arg7[%c0_40, %c0_41] : memref<16x1xf32, #tpu.memory_space<vmem>>, vector<16x1xf32>
      %c0_42 = arith.constant 0 : index
      %c0_43 = arith.constant 0 : index
      %75 = vector.load %arg8[%c0_42, %c0_43] : memref<16x1xf32, #tpu.memory_space<vmem>>, vector<16x1xf32>
      %76 = math.log %75 : vector<16x1xf32>
      %77 = arith.addf %74, %76 : vector<16x1xf32>
      %c0_44 = arith.constant 0 : index
      %c0_45 = arith.constant 0 : index
      %78 = vector.load %arg9[%c0_44, %c0_45] : memref<16x1xf32, #tpu.memory_space<vmem>>, vector<16x1xf32>
      %79 = arith.mulf %69, %77 : vector<16x1xf32>
      %80 = arith.subf %78, %79 : vector<16x1xf32>
      %81 = tpu.reciprocal %73 : vector<16x1xf32> -> vector<16x1xf32>
      %82 = arith.mulf %80, %81 : vector<16x1xf32>
      %cst_46 = arith.constant -1.000000e+00 : f32
      %83 = vector.broadcast %cst_46 : f32 to vector<16x1xf32>
      %84 = arith.mulf %83, %82 : vector<16x1xf32>
      %cst_47 = arith.constant 0.000000e+00 : f32
      %85 = vector.broadcast %cst_47 : f32 to vector<16x1xf32>
      %86 = arith.select %14, %84, %85 : vector<16x1xi1>, vector<16x1xf32>
      %c0_48 = arith.constant 0 : index
      %c0_49 = arith.constant 0 : index
      %87 = vector.load %arg6[%c0_48, %c0_49] : memref<16x1xf32, #tpu.memory_space<vmem>>, vector<16x1xf32>
      tpu.vector_store %arg6[%c0_48, %c0_49], %86 {strides = array<i32>} : memref<16x1xf32, #tpu.memory_space<vmem>>, vector<16x1xf32>,
    } else {
    }
    return
  }
  func.func @transform_0(%arg0: i32, %arg1: i32) -> (i32, i32) {
    %c0_i32 = arith.constant 0 : i32
    %c0_i32_0 = arith.constant 0 : i32
    return %arg0, %c0_i32 : i32, i32
  }
  func.func @transform_1(%arg0: i32, %arg1: i32) -> (i32, i32) {
    %c0_i32 = arith.constant 0 : i32
    %c0_i32_0 = arith.constant 0 : i32
    return %c0_i32, %arg1 : i32, i32
  }
  func.func @transform_2(%arg0: i32, %arg1: i32) -> (i32, i32) {
    %c0_i32 = arith.constant 0 : i32
    %c0_i32_0 = arith.constant 0 : i32
    return %arg0, %c0_i32 : i32, i32
  }
  func.func @transform_3(%arg0: i32, %arg1: i32) -> (i32, i32) {
    %c0_i32 = arith.constant 0 : i32
    %c0_i32_0 = arith.constant 0 : i32
    return %c0_i32, %arg1 : i32, i32
  }
  func.func @transform_4(%arg0: i32, %arg1: i32) -> (i32, i32) {
    %c0_i32 = arith.constant 0 : i32
    %c0_i32_0 = arith.constant 0 : i32
    return %arg0, %c0_i32 : i32, i32
  }
}

</mosaic_0001>

<bundles_post_ra>
// kernel: tpu_custom_call.1
= control target key start
LH: loop header
LB: loop body
LE: loop exit
PB: predicated region body
PF: predicated region fallthrough
CT: control target
= control target key end

     0   :  { %vm74_vm0 = vcmask 261120   ;;  %v18_v8 = vlaneseq  ;;  %v332_v12 = vmov 0   ;;  %vm59_vm3 = vcmask 7168   ;;  %s455_s3 = inlined_call_operand.vmem [shape: f32[32,16], index: 3, kind: input, shape index: {}]   ;;  %s456_s2 = inlined_call_operand.vmem [shape: f32[16,32], index: 2, kind: input, shape index: {}]   ;;  %s457_s0 = inlined_call_operand.vmem [shape: s32[16,1], index: 0, kind: input, shape index: {}]   ;;  %s458_s1 = inlined_call_operand.vmem [shape: s32[1,16], index: 1, kind: input, shape index: {}]   ;;  %s459_s4 = inlined_call_operand.vmem [shape: f32[16,1], index: 4, kind: output, shape index: {}]  }
   0x1   :  { %v70_v0 = vld [vmem:[%s455_s3] sm:$0xff]  ;;  %v71_v1 = vld [vmem:[%s455_s3 + $0x8] sm:$0xff]  ;;  %v72_v2 = vld [vmem:[%s455_s3 + $0x10] sm:$0xff]  ;;  %315 = vset.pattern.permute.xlu0 %v332_v12  ;;  %314 = vset.pattern.permute.xlu1 %v332_v12  ;;  %v333_v13 = vmov -inf   ;;  %vm162_vm4 = vcmask 130048   ;;  %v334_v23 = vmov 0.0  }
   0x2   :  { %v303_v3 = vpack.c.bf16 %v71_v1, %v70_v0  ;;  %v73_v4 = vld [vmem:[%s455_s3 + $0x18] sm:$0xff]  ;;  %v68_v5 = vld [vmem:[%s456_s2] sm:$0xff]  ;;  %v69_v7 = vld [vmem:[%s456_s2 + $0x8] sm:$0xff]  ;;  %v19_v9 = vshrl.u32 %v18_v8, 7  ;;  %v378_v10 = vand.u32 127, %v18_v8  ;;  %60 = vst.msk [vmem:[#allocation2] sm:$0xff] %vm59_vm3, %v333_v13 }
   0x3   :  { %v307_v6 = vpack.c.bf16 %v73_v4, %v72_v2  ;;  %300 = vmatprep.mubr.msk.f32.mxu0 %vm74_vm0, %v68_v5  ;;  %61 = vst.msk [vmem:[#allocation2 + $0x8] sm:$0xff] %vm59_vm3, %v333_v13  ;;  %v38_v22 = vld [vmem:[%s457_s0] sm:$0xff]  ;;  %62 = vst.msk [vmem:[#allocation3] sm:$0xff] %vm59_vm3, %v334_v23  ;;  %v39_v32 = vld [vmem:[%s457_s0 + $0x8] sm:$0xff] }
   0x4   :  { %304 = vmatprep.subr.bf16.mxu0 %v303_v3  ;;  %v380_v11 = vadd.s32 8, %v19_v9  ;;  %vm29_vm2 = vcmp.ne.s32.totalorder %v378_v10, %v19_v9  ;;  %vm31_vm5 = vcmp.lt.s32.totalorder %v378_v10, 16  ;;  %63 = vst.msk [vmem:[#allocation3 + $0x8] sm:$0xff] %vm59_vm3, %v334_v23  ;;  %64 = vst.msk [vmem:[#allocation4] sm:$0xff] %vm59_vm3, %v334_v23  ;;  %v281_v33 = vld [vmem:[%s458_s1] ss:$0 sm:$0xff] }
   0x5   :  { %306 = vmatpush3.bf16.msra.mxu0 %v303_v3  ;;  %65 = vst.msk [vmem:[#allocation4 + $0x8] sm:$0xff] %vm59_vm3, %v334_v23  ;;  %66 = vst.msk [vmem:[#allocation5] sm:$0xff] %vm59_vm3, %v334_v23 }
   0x6   :  { %308 = vmatprep.subr.bf16.mxu0 %v307_v6  ;;  %vm30_vm1 = vcmp.ne.s32.totalorder %v378_v10, %v380_v11  ;;  %67 = vst.msk [vmem:[#allocation5 + $0x8] sm:$0xff] %vm59_vm3, %v334_v23  ;;  %vm36_vm8 = vmand %vm29_vm2, %vm31_vm5 }
   0x7   :  { %vm37_vm9 = vmand %vm30_vm1, %vm31_vm5 }
   0x9   :  { %310 = vmatpush3.bf16.msra.mxu0 %v307_v6  ;;  %v160_v24 = vld [vmem:[#allocation2] sm:$0xff] }
   0xa   :  { %v161_v27 = vld [vmem:[#allocation2 + $0x8] sm:$0xff]  ;;  %v195_v62 = vld [vmem:[#allocation3] sm:$0xff] }
   0xb   :  { %v196_v2 = vld [vmem:[#allocation3 + $0x8] sm:$0xff]  ;;  %v216_v12 = vld [vmem:[#allocation4] sm:$0xff] }
   0xc   :  { %301 = vmatmul.mubr.msk.f32.vlgmr.msra.gmra.mrb[0].mxu0 %vm74_vm0, %v69_v7  ;;  %v230_v56 = vld [vmem:[#allocation5] sm:$0xff] }
   0xd   :  { %v231_v7 = vld [vmem:[#allocation5 + $0x8] sm:$0xff] }
  0xdf   :  { %v302_v14 = vpop.f32.mrb[0].mxu0 }
  0xe0   :  { %v147_v15 = vpop.f32.mrb[1].mxu0  ;;  %v387_v16 = vmul.f32 14.285714, %v302_v14 }
  0xe1   :  { %v389_v17 = vmul.f32 14.285714, %v147_v15 }
  0xe2   :  { %v159_v20 = vsel %vm31_vm5, %v387_v16, -inf  ;;  %v178_v41 = vsel %vm37_vm9, %v387_v16, -inf }
  0xe3   :  { %v158_v18 = vsel %vm31_vm5, %v389_v17, -inf  ;;  %v166_v21 = vsel %vm162_vm4, %v159_v20, -inf  ;;  %v177_v37 = vsel %vm36_vm8, %v389_v17, -inf }
  0xe4   :  { %v163_v19 = vsel %vm162_vm4, %v158_v18, -inf }
  0xe5   :  { %164 = vmax.xlane.f32.xlu0 %v163_v19 }
  0xe9   :  { %167 = vmax.xlane.f32.xlu0 %v166_v21 }
  0xff   :  { %42 = vperm.xlu0 %315, %v38_v22  }
 0x172   :  { %v165_v25 = vpop.xlane.xlu0 %164 }
 0x173   :  { %v169_v26 = vmax.f32 %v160_v24, %v165_v25 }
 0x175   :  { %v171_v28 = vsub.f32 %v160_v24, %v169_v26  ;;  %210 = vst.msk [vmem:[#allocation2] sm:$0xff] %vm59_vm3, %v169_v26  ;;  %181 = vperm.xlu1 %314, %v169_v26  }
 0x176   :  { %v168_v29 = vpop.xlane.xlu0 %167 }
 0x177   :  { %v170_v30 = vmax.f32 %v161_v27, %v168_v29  ;;  %v173_v59 = vmul.f32 1.442695, %v171_v28 }
 0x179   :  { %v172_v31 = vsub.f32 %v161_v27, %v170_v30  ;;  %211 = vst.msk [vmem:[#allocation2 + $0x8] sm:$0xff] %vm59_vm3, %v170_v30  ;;  %186 = vperm.xlu1 %314, %v170_v30  }
 0x17b   :  { %v175_v60 = vmul.f32 1.442695, %v172_v31 }
 0x17c   :  { %v251_v24 = vld [vmem:[#allocation2] sm:$0xff] }
 0x17d   :  { %45 = vperm.xlu1 %314, %v39_v32  }
 0x17e   :  { %v43_v34 = vpop.permute.xlu0 %42 }
 0x17f   :  { %vm51_vm6 = vcmp.eq.s32.totalorder %v43_v34, %v281_v33 }
 0x180   :  { %vm53_vm7 = vmand %vm51_vm6, %vm29_vm2  ;;  %v252_v30 = vld [vmem:[#allocation2 + $0x8] sm:$0xff] }
 0x181   :  { %v284_v35 = vsel %vm53_vm7, 1.0, %v334_v23 }
 0x182   :  { %v232_v36 = vsel %vm162_vm4, %v284_v35, 0.0  ;;  %v218_v52 = vmul.f32 %v284_v35, %v389_v17  ;;  %v217_v17 = vld [vmem:[#allocation4 + $0x8] sm:$0xff] }
 0x183   :  { %233 = vadd.xlane.f32.xlu0 %v232_v36 }
 0x184   :  { %v220_v53 = vsel %vm162_vm4, %v218_v52, 0.0 }
 0x1f4   :  { %v182_v38 = vpop.permute.xlu1 %181 }
 0x1f5   :  { %v189_v39 = vsub.f32 %v177_v37, %v182_v38 }
 0x1f7   :  { %v191_v40 = vmul.f32 1.442695, %v189_v39 }
 0x1f8   :  { %v187_v42 = vpop.permute.xlu1 %186 }
 0x1f9   :  { %316 = vpow2.f32 %v191_v40  ;;  %v190_v43 = vsub.f32 %v178_v41, %v187_v42 }
 0x1fb   :  { %v193_v44 = vmul.f32 1.442695, %v190_v43 }
 0x1fc   :  { %v46_v45 = vpop.permute.xlu1 %45 }
 0x1fd   :  { %318 = vpow2.f32 %v193_v44  ;;  %vm52_vm10 = vcmp.eq.s32.totalorder %v46_v45, %v281_v33 }
 0x1fe   :  { %vm54_vm11 = vmand %vm52_vm10, %vm30_vm1  ;;  %320 = vpow2.f32 %v173_v59 }
 0x1ff   :  { %v285_v50 = vsel %vm54_vm11, 1.0, %v334_v23  ;;  %322 = vpow2.f32 %v175_v60 }
 0x200   :  { %v235_v51 = vsel %vm162_vm4, %v285_v50, 0.0  ;;  %v219_v54 = vmul.f32 %v285_v50, %v387_v16 }
 0x202   :  { %v223_v55 = vsel %vm162_vm4, %v219_v54, 0.0 }
 0x203   :  { %v317_v46 = vpop.eup %316 }
 0x204   :  { %v199_v47 = vsel %vm162_vm4, %v317_v46, 0.0 }
 0x205   :  { %200 = vadd.xlane.f32.xlu1 %v199_v47 }
 0x207   :  { %v319_v48 = vpop.eup %318 }
 0x208   :  { %v202_v49 = vsel %vm162_vm4, %v319_v48, 0.0  ;;  %v321_v61 = vpop.eup %320 }
 0x209   :  { %203 = vadd.xlane.f32.xlu1 %v202_v49  ;;  %v197_v63 = vmul.f32 %v321_v61, %v195_v62  ;;  %v323_v0 = vpop.eup %322 }
 0x20a   :  { %v198_v4 = vmul.f32 %v323_v0, %v196_v2 }
 0x20d   :  { %236 = vadd.xlane.f32.xlu1 %v235_v51 }
 0x210   :  { %v234_v57 = vpop.xlane.xlu0 %233 }
 0x211   :  { %221 = vadd.xlane.f32.xlu1 %v220_v53  ;;  %v238_v58 = vadd.f32 %v234_v57, %v230_v56 }
 0x213   :  { %240 = vst.msk [vmem:[#allocation5] sm:$0xff] %vm59_vm3, %v238_v58 }
 0x215   :  { %224 = vadd.xlane.f32.xlu1 %v223_v55 }
 0x21a   :  { %v245_v8 = vld [vmem:[#allocation5] sm:$0xff] }
 0x21b   :  { %vm247_vm12 = vcmp.eq.f32.partialorder %v245_v8, 0.0 }
 0x21c   :  { %v249_v16 = vsel %vm247_vm12, 1.0, %v245_v8 }
 0x292   :  { %v201_v1 = vpop.xlane.xlu1 %200 }
 0x293   :  { %v205_v3 = vadd.f32 %v201_v1, %v197_v63 }
 0x295   :  { %208 = vst.msk [vmem:[#allocation3] sm:$0xff] %vm59_vm3, %v205_v3 }
 0x296   :  { %v204_v5 = vpop.xlane.xlu1 %203 }
 0x297   :  { %v206_v6 = vadd.f32 %v204_v5, %v198_v4 }
 0x299   :  { %209 = vst.msk [vmem:[#allocation3 + $0x8] sm:$0xff] %vm59_vm3, %v206_v6 }
 0x29a   :  { %v237_v9 = vpop.xlane.xlu1 %236 }
 0x29b   :  { %v239_v10 = vadd.f32 %v237_v9, %v231_v7 }
 0x29c   :  { %v253_v11 = vld [vmem:[#allocation3] sm:$0xff] }
 0x29d   :  { %324 = vlog2.f32 %v253_v11  ;;  %241 = vst.msk [vmem:[#allocation5 + $0x8] sm:$0xff] %vm59_vm3, %v239_v10 }
 0x29e   :  { %v222_v13 = vpop.xlane.xlu1 %221 }
 0x29f   :  { %v226_v14 = vadd.f32 %v222_v13, %v216_v12 }
 0x2a0   :  { %v254_v15 = vld [vmem:[#allocation3 + $0x8] sm:$0xff] }
 0x2a1   :  { %326 = vlog2.f32 %v254_v15  ;;  %228 = vst.msk [vmem:[#allocation4] sm:$0xff] %vm59_vm3, %v226_v14 }
 0x2a2   :  { %v225_v18 = vpop.xlane.xlu1 %224  ;;  %328 = vrcp.f32 %v249_v16 }
 0x2a3   :  { %v227_v19 = vadd.f32 %v225_v18, %v217_v17 }
 0x2a4   :  { %v246_v20 = vld [vmem:[#allocation5 + $0x8] sm:$0xff] }
 0x2a5   :  { %vm248_vm13 = vcmp.eq.f32.partialorder %v246_v20, 0.0  ;;  %229 = vst.msk [vmem:[#allocation4 + $0x8] sm:$0xff] %vm59_vm3, %v227_v19 }
 0x2a6   :  { %v250_v21 = vsel %vm248_vm13, 1.0, %v246_v20 }
 0x2a7   :  { %v325_v22 = vpop.eup %324  ;;  %330 = vrcp.f32 %v250_v21 }
 0x2a8   :  { %v256_v23 = vmul.f32 0.6931472, %v325_v22  ;;  %v261_v31 = vld [vmem:[#allocation4] sm:$0xff] }
 0x2aa   :  { %v259_v25 = vadd.f32 %v256_v23, %v251_v24 }
 0x2ab   :  { %v327_v26 = vpop.eup %326 }
 0x2ac   :  { %v258_v27 = vmul.f32 0.6931472, %v327_v26  ;;  %v263_v28 = vmul.f32 %v259_v25, %v245_v8  ;;  %v329_v29 = vpop.eup %328  ;;  %v262_v36 = vld [vmem:[#allocation4 + $0x8] sm:$0xff] }
 0x2ae   :  { %v260_v32 = vadd.f32 %v258_v27, %v252_v30  ;;  %v265_v33 = vsub.f32 %v261_v31, %v263_v28 }
 0x2b0   :  { %v264_v34 = vmul.f32 %v260_v32, %v246_v20  ;;  %v269_v35 = vmul.f32 %v329_v29, %v265_v33 }
 0x2b1   :  { %v331_v39 = vpop.eup %330 }
 0x2b2   :  { %v271_v37 = vmul.f32 -1.0, %v269_v35  ;;  %v266_v38 = vsub.f32 %v262_v36, %v264_v34 }
 0x2b4   :  { %275 = vst.msk [vmem:[%s459_s4] sm:$0xff] %vm59_vm3, %v271_v37  ;;  %v270_v40 = vmul.f32 %v331_v39, %v266_v38 }
 0x2b6   :  { %v272_v41 = vmul.f32 -1.0, %v270_v40 }
 0x2b8   :  { %276 = vst.msk [vmem:[%s459_s4 + $0x8] sm:$0xff] %vm59_vm3, %v272_v41 }

</bundles_post_ra>
